<compile_context>
chip_gen: v7x
topology: tpu7x:2x2x1
jax: 0.10.0
libtpu: 0.0.40
codegen_flags: <defaults>
</compile_context>

<pallas_src>
import functools

import jax
import jax.numpy as jnp
import numpy as np
from jax import lax
from jax.experimental import pallas as pl
from jax.experimental.pallas import tpu as pltpu


def _unetconv_kernel(ks, tl, l_true, xw_ref, w1_ref, w2_ref, b_ref, o_ref):
    """One (batch, L-tile) grid step of
       conv1 + BN1 + ReLU (+ eval Dropout = id) + conv2 + BN2 + ReLU.

    xw_ref : (1, 1, Cin, tl + 4*pad)  halo window of zero-extended x
    w1_ref : (ks, Cout, Cin)          conv1 weight taps, BN1 scale folded in
    w2_ref : (ks, Cout, Cout)         conv2 weight taps, BN2 scale folded in
    b_ref  : (2, Cout, 1)  f32        folded biases [b1, b2]
    o_ref  : (1, Cout, tl)
    """
    pad = ks // 2
    lh = tl + 2 * pad                      # conv1 output width needed by conv2

    # ---- conv1 (+ folded BN1 scale): ks accumulating MXU matmuls ----------
    xw = xw_ref[0, 0]                                          # (Cin, tl + 4*pad)
    h = jnp.dot(w1_ref[0], xw[:, 0:lh], preferred_element_type=jnp.float32)
    for k in range(1, ks):                                     # static unroll
        h += jnp.dot(w1_ref[k], xw[:, k:k + lh],
                     preferred_element_type=jnp.float32)
    h = jnp.maximum(h + b_ref[0], 0.0)                         # bias + ReLU (Cout, lh)

    # Zero halo columns outside the true sequence: conv2 must see zero-padded
    # h, not "conv1 evaluated on zero-extended x".  (1, lh) broadcast select.
    t = pl.program_id(1)
    pos = t * tl - pad + lax.broadcasted_iota(jnp.int32, (1, lh), 1)
    h = jnp.where((pos >= 0) & (pos < l_true), h, 0.0)

    # ---- conv2 (+ folded BN2 scale); Dropout1d is identity in eval mode ----
    h = h.astype(w2_ref.dtype)
    y = jnp.dot(w2_ref[0], h[:, 0:tl], preferred_element_type=jnp.float32)
    for k in range(1, ks):
        y += jnp.dot(w2_ref[k], h[:, k:k + tl],
                     preferred_element_type=jnp.float32)
    y = jnp.maximum(y + b_ref[1], 0.0)                         # bias + ReLU (Cout, tl)

    o_ref[0] = y.astype(o_ref.dtype)


def _default_max_tile_l():
    """Bigger lane tiles where VMEM allows (v5e/v6e: 128 MiB -> 2048 lanes)."""
    try:
        vmem = getattr(pltpu.get_tpu_info(), "vmem_capacity_bytes",
                       64 * 1024 * 1024)
    except Exception:
        vmem = 64 * 1024 * 1024
    return 2048 if vmem >= 96 * 1024 * 1024 else 1024


def unetconv_forward(x, params, ks, *, compute_dtype=jnp.bfloat16,
                     out_dtype=None, max_tile_l=None):
    """x: (N, Cin, L).  Returns (N, Cout, L) in `out_dtype` (default:
    `compute_dtype`).  Eval-mode forward matching the PyTorch module."""
    pad = ks // 2
    N, cin, L = x.shape
    cout = params["w1"].shape[0]
    eps = 1e-5
    if out_dtype is None:
        out_dtype = compute_dtype
    if max_tile_l is None:
        max_tile_l = _default_max_tile_l()

    # ---- fold conv bias + BatchNorm (eval, running stats) into weight/bias ----
    #   BN(conv(x)) = (s*w) (*) x + ((cb - m)*s + be),   s = g / sqrt(v + eps)
    # Scale is applied to the weights in f32 BEFORE the bf16 cast.
    def fold(w, cb, g, be, m, v):
        s = (g / jnp.sqrt(v + eps)).astype(jnp.float32)            # (Cout,)
        wt = jnp.transpose(w, (2, 0, 1)).astype(jnp.float32)       # (ks, Cout, C)
        wt = (wt * s[None, :, None]).astype(compute_dtype)
        b = ((cb - m) * s + be).astype(jnp.float32).reshape(cout, 1)
        return wt, b

    w1t, b1 = fold(params["w1"], params["b1"], params["g1"], params["be1"],
                   params["m1"], params["v1"])
    w2t, b2 = fold(params["w2"], params["b2"], params["g2"], params["be2"],
                   params["m2"], params["v2"])
    bias = jnp.stack([b1, b2], axis=0)                             # (2, Cout, 1)

    # ---- L tiling: lane-dense (multiple-of-128) output tiles ----
    LANE = 128
    if L <= max_tile_l:
        tl, T = -(-L // LANE) * LANE, 1
    else:
        tl, T = max_tile_l, -(-L // max_tile_l)
    L_t = tl * T
    win = tl + 4 * pad                    # x halo window per tile
    lh = tl + 2 * pad

    # ---- the only wrapper pass over x: f32->bf16 cast fused with zero pad /
    #      halo windowing (static contiguous slices; no gather, no ks-fold) ----
    xp = jnp.pad(x.astype(compute_dtype),
                 ((0, 0), (0, 0), (2 * pad, (L_t - L) + 2 * pad)))  # (N, Cin, L_t + 4*pad)
    if T == 1:
        xw = xp[:, None]                                            # (N, 1, Cin, win)
    else:
        xw = jnp.stack([xp[:, :, t * tl:t * tl + win] for t in range(T)],
                       axis=1)                                      # (N, T, Cin, win)

    kernel = functools.partial(_unetconv_kernel, ks, tl, L)
    const3 = lambda n, t: (0, 0, 0)

    # VMEM budget from the actual footprint (double-buffered blocks plus
    # in-kernel temporaries, 4x safety), capped at 48 MiB.
    csz = jnp.dtype(compute_dtype).itemsize
    osz = jnp.dtype(out_dtype).itemsize
    blk = (2 * (cin * win * csz + cout * tl * osz)
           + 2 * (w1t.size + w2t.size) * csz + 2 * bias.size * 4)
    tmp = cout * lh * (4 + csz) + cout * tl * 4 + cin * win * csz
    vmem_limit = int(min(48 * 1024 * 1024,
                         max(16 * 1024 * 1024, 4 * (blk + tmp))))

    out = pl.pallas_call(
        kernel,
        out_shape=jax.ShapeDtypeStruct((N, cout, L_t), out_dtype),
        grid_spec=pltpu.PrefetchScalarGridSpec(
            num_scalar_prefetch=0,
            grid=(N, T),
            in_specs=[
                pl.BlockSpec((1, 1, cin, win), lambda n, t: (n, t, 0, 0)),  # x window
                pl.BlockSpec((ks, cout, cin), const3),                      # w1 (scaled)
                pl.BlockSpec((ks, cout, cout), const3),                     # w2 (scaled)
                pl.BlockSpec((2, cout, 1), const3),                         # biases
            ],
            out_specs=pl.BlockSpec((1, cout, tl), lambda n, t: (n, 0, t)),
        ),
        compiler_params=pltpu.CompilerParams(
            dimension_semantics=("parallel", "parallel"),
            vmem_limit_bytes=vmem_limit),
    )(xw, w1t, w2t, bias)

    return out[:, :, :L] if L_t != L else out


def _reference(x, params, ks, compute_dtype=jnp.float32):
    """Pure-JAX reference (eval-mode PyTorch semantics).  `compute_dtype`
    rounds the matmul operands the same way the kernel does."""
    pad = ks // 2
    eps = 1e-5
    dn = ("NCH", "OIH", "NCH")
    q = lambda a: a.astype(compute_dtype).astype(jnp.float32)

    def block(h, w, b, g, be, m, v):
        y = lax.conv_general_dilated(q(h), q(w), window_strides=(1,),
                                     padding=[(pad, pad)], dimension_numbers=dn)
        y = y + b[None, :, None]
        y = (y - m[None, :, None]) / jnp.sqrt(v[None, :, None] + eps)
        y = y * g[None, :, None] + be[None, :, None]
        return jnp.maximum(y, 0.0)

    h = block(x, params["w1"], params["b1"], params["g1"], params["be1"],
              params["m1"], params["v1"])
    # Dropout1d -> identity in eval mode
    return block(h, params["w2"], params["b2"], params["g2"], params["be2"],
                 params["m2"], params["v2"])


def make_params(key, cin, cout, ks):
    keys = jax.random.split(key, 2)
    f32 = jnp.float32
    return {
        "w1": 0.1 * jax.random.normal(keys[0], (cout, cin, ks), f32),
        "b1": 0.01 * jnp.arange(cout, dtype=f32),
        "w2": 0.1 * jax.random.normal(keys[1], (cout, cout, ks), f32),
        "b2": -0.01 * jnp.arange(cout, dtype=f32),
        "g1": 1.0 + 0.1 * jnp.arange(cout, dtype=f32),
        "be1": 0.05 * jnp.arange(cout, dtype=f32),
        "m1": 0.02 * jnp.arange(cout, dtype=f32),
        "v1": 1.0 + 0.05 * jnp.arange(cout, dtype=f32),
        "g2": 1.0 - 0.02 * jnp.arange(cout, dtype=f32),
        "be2": -0.03 * jnp.arange(cout, dtype=f32),
        "m2": -0.01 * jnp.arange(cout, dtype=f32),
        "v2": 1.0 + 0.1 * jnp.arange(cout, dtype=f32),
    }


if __name__ == "__main__":
    # Small shapes consistent with Conv1d NCL input: batch=2, in_ch=4, len=16.
    N, CIN, COUT, L, KS = 2, 4, 8, 16, 3   # Dropout p irrelevant in eval mode

    key = jax.random.PRNGKey(0)
    kx, kp = jax.random.split(key)
    x = jax.random.normal(kx, (N, CIN, L), jnp.float32)
    params = make_params(kp, CIN, COUT, KS)

    # Exact-math check: f32 operands / f32 output vs f32 reference.
    out_f32 = jax.block_until_ready(
        unetconv_forward(x, params, KS, compute_dtype=jnp.float32,
                         out_dtype=jnp.float32))
    ref_f32 = _reference(x, params, KS, compute_dtype=jnp.float32)
    np.testing.assert_allclose(np.asarray(out_f32), np.asarray(ref_f32),
                               rtol=1e-4, atol=1e-4)

    # Multi-tile path (T > 1): exercises halo windowing and edge masking.
    L2 = 300
    x2 = jax.random.normal(kx, (N, CIN, L2), jnp.float32)
    out_mt = jax.block_until_ready(
        unetconv_forward(x2, params, KS, compute_dtype=jnp.float32,
                         out_dtype=jnp.float32, max_tile_l=128))
    ref_mt = _reference(x2, params, KS, compute_dtype=jnp.float32)
    np.testing.assert_allclose(np.asarray(out_mt), np.asarray(ref_mt),
                               rtol=1e-4, atol=1e-4)

    # Default fast path: bf16 operands + bf16 output, compared against a
    # reference that rounds its conv operands the same way.
    out_bf16 = jax.block_until_ready(unetconv_forward(x, params, KS))
    ref_bf16 = _reference(x, params, KS, compute_dtype=jnp.bfloat16)
    np.testing.assert_allclose(np.asarray(out_bf16.astype(jnp.float32)),
                               np.asarray(ref_bf16), rtol=2e-2, atol=2e-2)

    print("KERNEL_OK")
</pallas_src>

<mosaic_0001>
module attributes {stable_mosaic.version = 11 : i64} {
  func.func @_unetconv_kernel(%arg0: i32, %arg1: i32, %arg2: memref<1x1x4x132xf32, #tpu.memory_space<vmem>>, %arg3: memref<3x8x4xf32, #tpu.memory_space<vmem>>, %arg4: memref<3x8x8xf32, #tpu.memory_space<vmem>>, %arg5: memref<2x8x1xf32, #tpu.memory_space<vmem>>, %arg6: memref<1x8x128xf32, #tpu.memory_space<vmem>>) attributes {dimension_semantics = [#tpu.dimension_semantics<parallel>, #tpu.dimension_semantics<parallel>], iteration_bounds = array<i64: 2, 1>, scalar_prefetch = 0 : i64, scratch_operands = 0 : i64, tpu.core_type = #tpu.core_type<tc>, window_params = [{transform_indices = @transform_0, window_bounds = array<i64: 1, 1, 4, 132>}, {pipeline_mode = #tpu.pipeline_mode<synchronous>, transform_indices = @transform_1, window_bounds = array<i64: 3, 8, 4>}, {pipeline_mode = #tpu.pipeline_mode<synchronous>, transform_indices = @transform_2, window_bounds = array<i64: 3, 8, 8>}, {pipeline_mode = #tpu.pipeline_mode<synchronous>, transform_indices = @transform_3, window_bounds = array<i64: 2, 8, 1>}, {transform_indices = @transform_4, window_bounds = array<i64: 1, 8, 128>}]} {
    %c0 = arith.constant 0 : index
    %c0_0 = arith.constant 0 : index
    %c0_1 = arith.constant 0 : index
    %c0_2 = arith.constant 0 : index
    %0 = vector.load %arg2[%c0, %c0_0, %c0_1, %c0_2] : memref<1x1x4x132xf32, #tpu.memory_space<vmem>>, vector<1x1x4x132xf32>
    %1 = vector.shape_cast %0 : vector<1x1x4x132xf32> to vector<4x132xf32>
    %c0_3 = arith.constant 0 : index
    %c0_4 = arith.constant 0 : index
    %c0_5 = arith.constant 0 : index
    %2 = vector.load %arg3[%c0_3, %c0_4, %c0_5] : memref<3x8x4xf32, #tpu.memory_space<vmem>>, vector<1x8x4xf32>
    %3 = vector.shape_cast %2 : vector<1x8x4xf32> to vector<8x4xf32>
    %4 = vector.extract_strided_slice %1 {offsets = [0, 0], sizes = [4, 130], strides = [1, 1]} : vector<4x132xf32> to vector<4x130xf32>
    %cst = arith.constant dense<0.000000e+00> : vector<8x130xf32>
    %5 = tpu.matmul %3, %4, %cst {dimension_numbers = #tpu.dot_dimension_numbers<[1], [0], [0], [1], [0, 0, 1, 1], [], []>} : vector<8x4xf32>, vector<4x130xf32>, vector<8x130xf32> -> vector<8x130xf32>
    %c1 = arith.constant 1 : index
    %c0_6 = arith.constant 0 : index
    %c0_7 = arith.constant 0 : index
    %6 = vector.load %arg3[%c1, %c0_6, %c0_7] : memref<3x8x4xf32, #tpu.memory_space<vmem>>, vector<1x8x4xf32>
    %7 = vector.shape_cast %6 : vector<1x8x4xf32> to vector<8x4xf32>
    %8 = vector.extract_strided_slice %1 {offsets = [0, 1], sizes = [4, 130], strides = [1, 1]} : vector<4x132xf32> to vector<4x130xf32>
    %cst_8 = arith.constant dense<0.000000e+00> : vector<8x130xf32>
    %9 = tpu.matmul %7, %8, %cst_8 {dimension_numbers = #tpu.dot_dimension_numbers<[1], [0], [0], [1], [0, 0, 1, 1], [], []>} : vector<8x4xf32>, vector<4x130xf32>, vector<8x130xf32> -> vector<8x130xf32>
    %10 = arith.addf %5, %9 : vector<8x130xf32>
    %c2 = arith.constant 2 : index
    %c0_9 = arith.constant 0 : index
    %c0_10 = arith.constant 0 : index
    %11 = vector.load %arg3[%c2, %c0_9, %c0_10] : memref<3x8x4xf32, #tpu.memory_space<vmem>>, vector<1x8x4xf32>
    %12 = vector.shape_cast %11 : vector<1x8x4xf32> to vector<8x4xf32>
    %13 = vector.extract_strided_slice %1 {offsets = [0, 2], sizes = [4, 130], strides = [1, 1]} : vector<4x132xf32> to vector<4x130xf32>
    %cst_11 = arith.constant dense<0.000000e+00> : vector<8x130xf32>
    %14 = tpu.matmul %12, %13, %cst_11 {dimension_numbers = #tpu.dot_dimension_numbers<[1], [0], [0], [1], [0, 0, 1, 1], [], []>} : vector<8x4xf32>, vector<4x130xf32>, vector<8x130xf32> -> vector<8x130xf32>
    %15 = arith.addf %10, %14 : vector<8x130xf32>
    %c0_12 = arith.constant 0 : index
    %c0_13 = arith.constant 0 : index
    %c0_14 = arith.constant 0 : index
    %16 = vector.load %arg5[%c0_12, %c0_13, %c0_14] : memref<2x8x1xf32, #tpu.memory_space<vmem>>, vector<1x8x1xf32>
    %17 = vector.shape_cast %16 : vector<1x8x1xf32> to vector<8x1xf32>
    %18 = vector.broadcast %17 : vector<8x1xf32> to vector<8x130xf32>
    %19 = arith.addf %15, %18 : vector<8x130xf32>
    %cst_15 = arith.constant 0.000000e+00 : f32
    %20 = vector.broadcast %cst_15 : f32 to vector<8x130xf32>
    %21 = arith.maximumf %19, %20 : vector<8x130xf32>
    %c128_i32 = arith.constant 128 : i32
    %22 = arith.muli %arg1, %c128_i32 : i32
    %c1_i32 = arith.constant 1 : i32
    %23 = arith.subi %22, %c1_i32 : i32
    %24 = tpu.iota {dimensions = array<i32: 1>} : vector<1x130xi32>
    %25 = vector.broadcast %23 : i32 to vector<1x130xi32>
    %26 = arith.addi %25, %24 : vector<1x130xi32>
    %c0_i32 = arith.constant 0 : i32
    %27 = vector.broadcast %c0_i32 : i32 to vector<1x130xi32>
    %28 = arith.cmpi sge, %26, %27 : vector<1x130xi32>
    %c16_i32 = arith.constant 16 : i32
    %29 = vector.broadcast %c16_i32 : i32 to vector<1x130xi32>
    %30 = arith.cmpi slt, %26, %29 : vector<1x130xi32>
    %31 = arith.andi %28, %30 : vector<1x130xi1>
    %cst_16 = arith.constant 0.000000e+00 : f32
    %32 = vector.shape_cast %31 : vector<1x130xi1> to vector<1x130xi1>
    %33 = vector.broadcast %32 : vector<1x130xi1> to vector<8x130xi1>
    %34 = vector.broadcast %cst_16 : f32 to vector<8x130xf32>
    %35 = arith.select %33, %21, %34 : vector<8x130xi1>, vector<8x130xf32>
    %c0_17 = arith.constant 0 : index
    %c0_18 = arith.constant 0 : index
    %c0_19 = arith.constant 0 : index
    %36 = vector.load %arg4[%c0_17, %c0_18, %c0_19] : memref<3x8x8xf32, #tpu.memory_space<vmem>>, vector<1x8x8xf32>
    %37 = vector.shape_cast %36 : vector<1x8x8xf32> to vector<8x8xf32>
    %38 = vector.extract_strided_slice %35 {offsets = [0, 0], sizes = [8, 128], strides = [1, 1]} : vector<8x130xf32> to vector<8x128xf32>
    %cst_20 = arith.constant dense<0.000000e+00> : vector<8x128xf32>
    %39 = tpu.matmul %37, %38, %cst_20 {dimension_numbers = #tpu.dot_dimension_numbers<[1], [0], [0], [1], [0, 0, 1, 1], [], []>} : vector<8x8xf32>, vector<8x128xf32>, vector<8x128xf32> -> vector<8x128xf32>
    %c1_21 = arith.constant 1 : index
    %c0_22 = arith.constant 0 : index
    %c0_23 = arith.constant 0 : index
    %40 = vector.load %arg4[%c1_21, %c0_22, %c0_23] : memref<3x8x8xf32, #tpu.memory_space<vmem>>, vector<1x8x8xf32>
    %41 = vector.shape_cast %40 : vector<1x8x8xf32> to vector<8x8xf32>
    %42 = vector.extract_strided_slice %35 {offsets = [0, 1], sizes = [8, 128], strides = [1, 1]} : vector<8x130xf32> to vector<8x128xf32>
    %cst_24 = arith.constant dense<0.000000e+00> : vector<8x128xf32>
    %43 = tpu.matmul %41, %42, %cst_24 {dimension_numbers = #tpu.dot_dimension_numbers<[1], [0], [0], [1], [0, 0, 1, 1], [], []>} : vector<8x8xf32>, vector<8x128xf32>, vector<8x128xf32> -> vector<8x128xf32>
    %44 = arith.addf %39, %43 : vector<8x128xf32>
    %c2_25 = arith.constant 2 : index
    %c0_26 = arith.constant 0 : index
    %c0_27 = arith.constant 0 : index
    %45 = vector.load %arg4[%c2_25, %c0_26, %c0_27] : memref<3x8x8xf32, #tpu.memory_space<vmem>>, vector<1x8x8xf32>
    %46 = vector.shape_cast %45 : vector<1x8x8xf32> to vector<8x8xf32>
    %47 = vector.extract_strided_slice %35 {offsets = [0, 2], sizes = [8, 128], strides = [1, 1]} : vector<8x130xf32> to vector<8x128xf32>
    %cst_28 = arith.constant dense<0.000000e+00> : vector<8x128xf32>
    %48 = tpu.matmul %46, %47, %cst_28 {dimension_numbers = #tpu.dot_dimension_numbers<[1], [0], [0], [1], [0, 0, 1, 1], [], []>} : vector<8x8xf32>, vector<8x128xf32>, vector<8x128xf32> -> vector<8x128xf32>
    %49 = arith.addf %44, %48 : vector<8x128xf32>
    %c1_29 = arith.constant 1 : index
    %c0_30 = arith.constant 0 : index
    %c0_31 = arith.constant 0 : index
    %50 = vector.load %arg5[%c1_29, %c0_30, %c0_31] : memref<2x8x1xf32, #tpu.memory_space<vmem>>, vector<1x8x1xf32>
    %51 = vector.shape_cast %50 : vector<1x8x1xf32> to vector<8x1xf32>
    %52 = vector.broadcast %51 : vector<8x1xf32> to vector<8x128xf32>
    %53 = arith.addf %49, %52 : vector<8x128xf32>
    %cst_32 = arith.constant 0.000000e+00 : f32
    %54 = vector.broadcast %cst_32 : f32 to vector<8x128xf32>
    %55 = arith.maximumf %53, %54 : vector<8x128xf32>
    %c0_33 = arith.constant 0 : index
    %c0_34 = arith.constant 0 : index
    %c0_35 = arith.constant 0 : index
    %56 = vector.load %arg6[%c0_33, %c0_34, %c0_35] : memref<1x8x128xf32, #tpu.memory_space<vmem>>, vector<1x8x128xf32>
    %57 = vector.shape_cast %56 : vector<1x8x128xf32> to vector<8x128xf32>
    %58 = vector.shape_cast %55 : vector<8x128xf32> to vector<1x8x128xf32>
    tpu.vector_store %arg6[%c0_33, %c0_34, %c0_35], %58 {strides = array<i32>} : memref<1x8x128xf32, #tpu.memory_space<vmem>>, vector<1x8x128xf32>,
    return
  }
  func.func @transform_0(%arg0: i32, %arg1: i32) -> (i32, i32, i32, i32) {
    %c0_i32 = arith.constant 0 : i32
    %c0_i32_0 = arith.constant 0 : i32
    %c0_i32_1 = arith.constant 0 : i32
    return %arg0, %arg1, %c0_i32, %c0_i32_0 : i32, i32, i32, i32
  }
  func.func @transform_1(%arg0: i32, %arg1: i32) -> (i32, i32, i32) {
    %c0_i32 = arith.constant 0 : i32
    %c0_i32_0 = arith.constant 0 : i32
    %c0_i32_1 = arith.constant 0 : i32
    %c0_i32_2 = arith.constant 0 : i32
    return %c0_i32, %c0_i32_0, %c0_i32_1 : i32, i32, i32
  }
  func.func @transform_2(%arg0: i32, %arg1: i32) -> (i32, i32, i32) {
    %c0_i32 = arith.constant 0 : i32
    %c0_i32_0 = arith.constant 0 : i32
    %c0_i32_1 = arith.constant 0 : i32
    %c0_i32_2 = arith.constant 0 : i32
    return %c0_i32, %c0_i32_0, %c0_i32_1 : i32, i32, i32
  }
  func.func @transform_3(%arg0: i32, %arg1: i32) -> (i32, i32, i32) {
    %c0_i32 = arith.constant 0 : i32
    %c0_i32_0 = arith.constant 0 : i32
    %c0_i32_1 = arith.constant 0 : i32
    %c0_i32_2 = arith.constant 0 : i32
    return %c0_i32, %c0_i32_0, %c0_i32_1 : i32, i32, i32
  }
  func.func @transform_4(%arg0: i32, %arg1: i32) -> (i32, i32, i32) {
    %c0_i32 = arith.constant 0 : i32
    %c0_i32_0 = arith.constant 0 : i32
    return %arg0, %c0_i32, %arg1 : i32, i32, i32
  }
}

</mosaic_0001>

<bundles_post_ra>
// kernel: tpu_custom_call.1
= control target key start
LH: loop header
LB: loop body
LE: loop exit
PB: predicated region body
PF: predicated region fallthrough
CT: control target
= control target key end

     0   :  { %9 = vsyncpa [#allocation3], 0  ;;  %s1253_s0 = inlined_call_operand.vmem [shape: f32[2,1,4,132], index: 0, kind: input, shape index: {}]   ;;  %s1254_s1 = inlined_call_operand.vmem [shape: f32[3,8,4], index: 1, kind: input, shape index: {}]   ;;  %s1255_s2 = inlined_call_operand.vmem [shape: f32[3,8,8], index: 2, kind: input, shape index: {}]   ;;  %s1256_s3 = inlined_call_operand.vmem [shape: f32[2,8,1], index: 3, kind: input, shape index: {}]   ;;  %s1257_s4 = inlined_call_operand.hbm [shape: f32[2,8,128], index: 4, kind: output, shape index: {}]  }
   0x1   :  { %11 = vsyncpa [#allocation3 + $0x1], 0  ;;  %s1079_s15 = smov 0   ;;  %s1081_s16 = smov 0  }
   0x2   :  { %s1083_s17 = smov 0   ;;  %s1085_s18 = smov 0  }
   0x3   :  { %s1087_s19 = smov 0   ;;  %s1089_s20 = smov 0  }
   0x4 LB: > { %s854_s21 = sadd.s32 4294967295, %s1046_s20   ;;  %s855_s22 = sadd.s32 4294967294, %s1046_s20   ;;  %s1046_s20 = sphi %s1089_s20, %s17_s20   ;;  %s1042_s19 = sphi %s1087_s19, %s1264_s19   ;;  %s1038_s18 = sphi %s1085_s18, %s1263_s18   ;;  %s1034_s17 = sphi %s1083_s17, %s1262_s17   ;;  %s1030_s16 = sphi %s1081_s16, %s1261_s16   ;;  %s1026_s15 = sphi %s1079_s15, %s1260_s15  }
   0x5   : > { %s29_s23 = sadd.s32 1, %s1042_s19  ;;  %s129_s24 = sadd.s32 1, %s1034_s17 }
   0x6   : > { %p31_p0 = scmp.ge.s32.totalorder %s29_s23, 2  ;;  %p139_p1 = scmp.ne.s32.totalorder %s1034_s17, %s1030_s16 }
   0x7   : > { %p140_p2 = scmp.eq.s32.totalorder %s854_s21, 1  ;;  %p145_p3 = scmp.ne.s32.totalorder %s1030_s16, %s1026_s15 }
   0x8   : > { %s1266_s23 = smov (%p31_p0, %s29_s23), 0  ;;  %p146_p5 = scmp.eq.s32.totalorder %s855_s22, 1 }
   0x9   : > { %p1119_p4 = por %p140_p2, %p139_p1  ;;  %s124_s26 = ssub.s32 %s1042_s19, %s1266_s23 }
   0xa   : > { %p858_p6 = scmp.ge.s32.totalorder %s1046_s20, 1  ;;  %p127_p7 = scmp.eq.s32.totalorder %s124_s26, 0 }
   0xb   : > { %p1126_p8 = por %p146_p5, %p145_p3  ;;  %p185_p9 = scmp.lt.s32.totalorder %s1046_s20, 3 }
   0xc   : > { %s1132_s28 = scalar_select %p127_p7, %s1034_s17, %s129_s24  }
   0xd   : > { %p186_p10 = pnand %p858_p6, %p185_p9 }
   0xe   : > { %p215_p11 = scmp.lt.s32.totalorder (!%p186_p10), %s1038_s18, 1  ;;  %v1048_v0 = vmov (!%p186_p10), 0.0   ;;  %v1049_v1 = vmov (!%p186_p10), 0   ;;  %vm240_vm0 = vcmask (!%p186_p10), 1043456   ;;  %s1050_s8 = smov (!%p186_p10), 126   ;;  %vm236_vm1 = vcmask (!%p186_p10), 31744  }
   0xf   : > { %189 = sbr.rel (%p186_p10) target bundleno = 724 (0x2d4), region = 36  ;;  %309 = vmatprep.mubr.f32.mxu0 (!%p186_p10), %v1048_v0  ;;  %387 = vmatprep.mubr.f32.mxu1 (!%p186_p10), %v1048_v0  ;;  %s1051_s9 = smov (!%p186_p10), 127   ;;  %v225_v4 = vld [vmem:[%s1254_s1] sm:$0xff] (!%p186_p10)  ;;  %vm234_vm2 = vcmask (!%p186_p10), 1039360   ;;  %vm400_vm3 = vcmask (!%p186_p10), 1031168   ;;  %v862_v10 = vld [vmem:[%s1254_s1 + $0x8] sm:$0xff] (!%p186_p10)  ;;  %v494_v16 = vlaneseq (!%p186_p10) }
  0x10   : > { %966 = vset.pattern.permute.xlu0 (!%p186_p10), %v1049_v1  ;;  %v482_v5 = vld [vmem:[%s1256_s3] sm:$0xff] (!%p186_p10)  ;;  %v869_v13 = vld [vmem:[%s1254_s1 + $0x10] sm:$0xff] (!%p186_p10)  ;;  %vm1052_vm4 = vmmov (!%p186_p10), 0   ;;  %vm523_vm8 = vcmask (!%p186_p10), 64512   ;;  %v879_v30 = vld [vmem:[%s1256_s3 + $0x8] sm:$0xff] (!%p186_p10)  ;;  %s212_s10 = sand.u32 (!%p186_p10), 1, %s1030_s16  }
  0x11   : > { %v495_v17 = vand.u32 (!%p186_p10), 127, %v494_v16  ;;  %v512_v28 = vld [vmem:[%s1255_s2] sm:$0xff] (!%p186_p10)  ;;  %v873_v33 = vld [vmem:[%s1255_s2 + $0x8] sm:$0xff] (!%p186_p10)  ;;  %v877_v37 = vld [vmem:[%s1255_s2 + $0x10] sm:$0xff] (!%p186_p10)  ;;  %s859_s11 = sshll.u32 (!%p186_p10), %s212_s10, 3  ;;  %s881_s12 = sshll.u32 (!%p186_p10), %s1038_s18, 7 }
  0x12   : > { %s214_s13 = scalar_lea.vmem (!%p186_p10), [#allocation2], %s859_s11  ;;  %s1206_s24 = scalar_lea.hbm (!%p186_p10), %s1257_s4, %s881_s12 }
  0x13   : > { %v498_v21 = vadd.s32 (!%p186_p10), 4294967295, %v495_v17  ;;  %s777_s14 = sshll.u32 (!%p186_p10), %s214_s13, 4  ;;  %s763_s26 = scalar_lea.sflag (!%p186_p10), [#allocation3], %s212_s10  ;;  %s1208_s14 = int_to_ptr.vmem [resolvable:$true] %s777_s14 }
  0x15   : > { %vm500_vm5 = vcmp.ge.s32.totalorder (!%p186_p10), %v498_v21, 0  ;;  %vm502_vm6 = vcmp.lt.s32.totalorder (!%p186_p10), %v498_v21, 16 }
  0x16   : > { %s216_s29 = scalar_select %p215_p11, %s1038_s18, 1  ;;  %vm504_vm7 = vmand %vm500_vm5, %vm502_vm6 }
  0x17   : > { %s1053_s18 = smov [#allocation2]  }
  0x18   : > { %s884_s30 = sshll.u32 %s216_s29, 3  ;;  %s968_s29 = scalar_lea.vmem %s1208_s14, 128 }
  0x19   : > { %s223_s7 = scalar_lea.vmem %s1253_s0, %s884_s30  ;;  %p969_p12 = scmp.ne.s32.totalorder %s1208_s14, %s968_s29 }
  0x1a   : > { %v224_v2 = vld [vmem:[%s223_s7] sm:$0xff]  ;;  %s972_s30 = sshll.u32 %s1053_s18, 4  ;;  %s973_s30 = int_to_ptr.vmem [resolvable:$false] %s972_s30 }
  0x1b   : > { %396 = vrot.lane.b32.xlu1 %v224_v2, %s1050_s8  ;;  %230 = vrot.lane.b32.xlu0 %v224_v2, %s1051_s9  ;;  %v229_v3 = vcombine.high %v224_v2, %v224_v2  ;;  %p970_p13 = pnand %p969_p12, %p1119_p4  ;;  %s974_s5 = scalar_lea.vmem %s973_s30, 256 }
  0x1c   : > { %p975_p1 = scmp.lt.s32.totalorder %s1208_s14, %s973_s30  ;;  %p976_p2 = scmp.lt.s32.totalorder %s974_s5, %s968_s29 }
  0x1d   : > { %866 = vmatprep.subr.msk.mxu1 %vm240_vm0, %v229_v3  ;;  %p971_p0 = pneg %p970_p13 }
  0x1e   : > { %867 = vmatpush1.msk.msra.mxu1 %vm240_vm0, %v224_v2  ;;  %p977_p3 = por %p976_p2, %p975_p1 }
  0x1f   : > { %398 = vrot.lane.b32.xlu1 %v229_v3, %s1050_s8  ;;  %232 = vrot.lane.b32.xlu0 %v229_v3, %s1051_s9 }
  0x20   : > { %868 = vmatmul.mubr.msk.f32.vlgmr.msra.gmra.mrb[0].mxu1 %vm236_vm1, %v225_v4  ;;  %891 = vmatprep.subr.mxu1 %v1048_v0  ;;  %p978_p5 = pnand %p977_p3, %p971_p0 }
  0x21   : > { %893 = vmatprep.mubr.msk.f32.mxu1 %vm1052_vm4, %v1048_v0 }
  0x23   : > { %485 = vperm.xlu0 %966, %v482_v5   ;;  %519 = vrot.lane.b32.xlu1 %v1048_v0, %s1051_s9 }
  0x8d   : > { %v397_v6 = vpop.permute.xlu1 %396  ;;  %v231_v7 = vpop.permute.xlu0 %230 }
  0x91   : > { %v399_v8 = vpop.permute.xlu1 %398  ;;  %v233_v9 = vpop.permute.xlu0 %232 }
  0x92   : > { %863 = vmatprep.subr.msk.mxu0 %vm240_vm0, %v233_v9  ;;  %v235_v11 = vsel %vm234_vm2, %v231_v7, %v233_v9  ;;  %v401_v12 = vsel %vm400_vm3, %v397_v6, %v399_v8 }
  0x93   : > { %864 = vmatpush1.msk.msra.mxu0 %vm240_vm0, %v235_v11 }
  0x94   : > { %865 = vmatmul.mubr.msk.f32.vlgmr.msra.gmra.mrb[0].mxu0 %vm236_vm1, %v862_v10  ;;  %870 = vmatprep.subr.msk.mxu0 %vm240_vm0, %v399_v8 }
  0x95   : > { %871 = vmatpush1.msk.msra.mxu0 %vm240_vm0, %v401_v12  ;;  %473 = vmatprep.mubr.f32.mxu0 %v1048_v0  ;;  %v520_v31 = vpop.permute.xlu1 %519 }
  0x96   : > { %896 = vmatprep.subr.mxu0 %v1048_v0 }
  0x98   : > { %872 = vmatmul.mubr.msk.f32.vlgmr.msra.gmra.mrb[2].mxu0 %vm236_vm1, %v869_v13 }
  0x99   : > { %898 = vmatprep.mubr.msk.f32.mxu0 %vm1052_vm4, %v1048_v0 }
  0xa2   : > { %v486_v23 = vpop.permute.xlu0 %485 }
  0xf3   : > { %v389_v14 = vpop.f32.mrb[0].mxu1 }
  0xf4   : > { %v391_v15 = vpop.f32.mrb[1].mxu1 }
 0x167   : > { %v311_v18 = vpop.f32.mrb[0].mxu0 }
 0x168   : > { %v390_v19 = vadd.f32 %v389_v14, %v311_v18  ;;  %v313_v20 = vpop.f32.mrb[1].mxu0 }
 0x16b   : > { %v475_v22 = vpop.f32.mrb[2].mxu0 }
 0x16c   : > { %v480_v24 = vadd.f32 %v475_v22, %v390_v19  ;;  %v477_v25 = vpop.f32.mrb[3].mxu0 }
 0x16e   : > { %v488_v26 = vadd.f32 %v486_v23, %v480_v24 }
 0x170   : > { %v490_v27 = vmax.f32 %v488_v26, 0.0 }
 0x172   : > { %897 = vmatpush3.msk.msra.mxu0 %vm504_vm7, %v490_v27  ;;  %v510_v29 = vsel %vm504_vm7, %v490_v27, 0.0 }
 0x173   : > { %672 = vrot.lane.b32.xlu0 %v510_v29, %s1050_s8  ;;  %517 = vrot.lane.b32.xlu1 %v510_v29, %s1051_s9 }
 0x174   : > { %899 = vmatmul.mubr.msk.f32.vlgmr.msra.gmra.mrb[4].mxu0 %vm523_vm8, %v512_v28 }
 0x177   : > { %756 = vperm.xlu0 %966, %v879_v30   ;;  %674 = vrot.lane.b32.xlu1 %v1048_v0, %s1050_s8 }
 0x1e5   : > { %v518_v32 = vpop.permute.xlu1 %517  ;;  %v673_v35 = vpop.permute.xlu0 %672 }
 0x1e6   : > { %v521_v34 = vsel %vm234_vm2, %v518_v32, %v520_v31 }
 0x1e7   : > { %892 = vmatpush3.msra.mxu1 %v521_v34 }
 0x1e8   : > { %894 = vmatmul.mubr.msk.f32.vlgmr.msra.gmra.mrb[2].mxu1 %vm523_vm8, %v873_v33  ;;  %901 = vmatprep.subr.mxu1 %v1048_v0 }
 0x1e9   : > { %v675_v36 = vpop.permute.xlu1 %674  ;;  %903 = vmatprep.mubr.msk.f32.mxu1 %vm1052_vm4, %v1048_v0 }
 0x1ea   : > { %v676_v38 = vsel %vm400_vm3, %v673_v35, %v675_v36 }
 0x1eb   : > { %902 = vmatpush3.msra.mxu1 %v676_v38 }
 0x1ec   : > { %904 = vmatmul.mubr.msk.f32.vlgmr.msra.gmra.mrb[4].mxu1 %vm523_vm8, %v877_v37 }
 0x1f6   : > { %v757_v47 = vpop.permute.xlu0 %756 }
 0x247   : > { %v666_v39 = vpop.f32.mrb[4].mxu0 }
 0x248   : > { %v900_v40 = vpop.f32.mrb[5].mxu0 }
 0x2bb   : > { %v593_v41 = vpop.f32.mrb[2].mxu1 }
 0x2bc   : > { %v667_v42 = vadd.f32 %v666_v39, %v593_v41  ;;  %v895_v43 = vpop.f32.mrb[3].mxu1 }
 0x2bf   : > { %v747_v44 = vpop.f32.mrb[4].mxu1 }
 0x2c0   : > { %v751_v45 = vadd.f32 %v747_v44, %v667_v42  ;;  %v905_v46 = vpop.f32.mrb[5].mxu1 }
 0x2c2   : > { %v759_v48 = vadd.f32 %v757_v47, %v751_v45 }
 0x2c4   : > { %v760_v49 = vmax.f32 %v759_v48, 0.0 }
 0x2c6   : > { %761 = vst [vmem:[%s214_s13] sm:$0xff] %v760_v49 }
 0x2c7   : > { %981 = shalt.err (!%p978_p5)
}
 0x2c8   : > { %s982_s6 = scalar_lea.hbm %s1206_s24, 128  ;;  %s986_s9 = scalar_lea.hbm %s1257_s4, 256 }
 0x2c9   : > { %p983_p6 = scmp.ne.s32.totalorder %s1206_s24, %s982_s6  ;;  %p987_p10 = scmp.lt.u32.totalorder %s1206_s24, %s1257_s4 }
 0x2ca   : > { %p988_p11 = scmp.lt.u32.totalorder %s986_s9, %s982_s6  ;;  %p990_p13 = scmp.lt.u32.totalorder %s982_s6, %s1206_s24 }
 0x2cb   : > { %p984_p7 = pnand %p983_p6, %p1119_p4 }
 0x2cc   : > { %p989_p12 = por %p988_p11, %p987_p10 }
 0x2cd   : > { %p985_p9 = pneg %p984_p7 }
 0x2ce   : > { %p991_p0 = por %p990_p13, %p989_p12 }
 0x2d0   : > { %p992_p1 = pnand %p991_p0, %p985_p9 }
 0x2d2   : > { %995 = shalt.err (!%p992_p1)
}
 0x2d3   : > { %906 = dma.vmem_to_hbm [thread:$0]  (%p1119_p4), %s1208_s14, 128, %s1206_s24, %s763_s26  }
 0x2d4 PF: > { %p912_p2 = scmp.ge.s32.totalorder %s1046_s20, 2  ;;  %s789_s12 = sand.u32 1, %s1026_s15  }
 0x2d5   : > { %s790_s13 = scalar_lea.sflag [#allocation3], %s789_s12 }
 0x2d6   : > { %p909_p3 = pnand %p912_p2, %p1126_p8 }
 0x2d8   : > { %1021 = dma.done.wait (!%p909_p3), %s790_s13, 128  }
 0x2d9   : > { %1023 = vsyncadd (!%p909_p3), %s790_s13, 4294967168  ;;  %s17_s20 = sadd.s32 1, %s1046_s20   ;;  %s1260_s15 = smov %s1030_s16 }
 0x2da   : > { %p14_p5 = scmp.ge.s32.totalorder %s17_s20, 4   ;;  %s1261_s16 = smov %s1034_s17 }
 0x2db   : > { %s1262_s17 = smov %s1132_s28  ;;  %s1263_s18 = smov %s1042_s19 }
 0x2dc   : > { %s1264_s19 = smov %s1266_s23  ;;  %16 = sbr.rel (!%p14_p5) target bundleno = 4 (0x4), region = 76 }
 0x2e3   :  { %795 = vsyncpa [#allocation3], 1 }
 0x2e4   :  { %797 = vsyncpa [#allocation3 + $0x1], 1 }

</bundles_post_ra>
